<compile_context>
chip_gen: v5e
topology: v5e:2x2
jax: 0.10.0
libtpu: 0.0.40
codegen_flags: <defaults>
</compile_context>

<pallas_src>
import jax
import jax.numpy as jnp
from jax.experimental import pallas as pl
from jax.experimental.pallas import tpu as pltpu


_LANE = 128
_TB_MIN = 512
_TB_MAX = 32768          # 9 x 32768 x 4B ~ 1.1 MiB per input tile (double-buffered ~2.3 MiB)
_PALLAS_MIN_M = 2048     # below this, fused XLA reduce_window wins outright


def _maxpool_kernel(win_ref, o_ref):
    """win_ref: (K*K, TB) window-offset rows x lane-dense flattened outputs.
    o_ref:   (1, TB) lane-dense output tile.
    Cross-sublane max reduce over the K*K rows (XLU), fully hidden under DMA."""
    o_ref[...] = jnp.max(win_ref[...], axis=0, keepdims=True)


def _round_up(x, m):
    return ((x + m - 1) // m) * m


def maxpool2d_pallas(x, kernel_size=3, stride=None):
    """MaxPool2d(kernel_size, stride=kernel_size by default, padding=0, ceil_mode=False).

    x: (N, C, H, W) float array. Returns (N, C, H_out, W_out).
    """
    K = kernel_size
    S = K if stride is None else stride
    N, C, H, W = x.shape
    if H < K or W < K:
        raise ValueError(f"Input spatial dims ({H},{W}) smaller than kernel {K} with padding=0")
    H_out = (H - K) // S + 1
    W_out = (W - K) // S + 1
    B = N * C
    M = B * H_out * W_out                     # flattened (batch, out_h, out_w)

    # Small-input fallback: slab build + pallas_call launch dominate for tiny M
    # (this covers the actual mpNN workload of a couple of 5x5 images).
    if M < _PALLAS_MIN_M:
        return jax.lax.reduce_window(
            x, -jnp.inf, jax.lax.max,
            window_dimensions=(1, 1, K, K),
            window_strides=(1, 1, S, S),
            padding="VALID",
        )

    xb = x.reshape(B, H, W)
    if S == K:
        # Non-overlapping windows: one crop + reshape + transpose (single XLA transpose).
        xc = xb[:, :K * H_out, :K * W_out]
        win = (xc.reshape(B, H_out, K, W_out, K)
                 .transpose(2, 4, 0, 1, 3)            # (dh, dw, b, oh, ow)
                 .reshape(K * K, M))
    else:
        # General stride (unused by mpNN): strided-slice extraction.
        cols = []
        for dh in range(K):
            for dw in range(K):
                cols.append(xb[:, dh:dh + S * H_out:S, dw:dw + S * W_out:S])
        win = jnp.stack(cols, axis=0).reshape(K * K, M)

    # Lane-tile size: multiple of 128, capped at 32768, sized for >= ~4 grid steps
    # when M allows (pipelining + megacore sharding of the "parallel" axis).
    m128 = _round_up(M, _LANE)
    TB = min(max(_round_up(pl.cdiv(m128, 4), _LANE), _TB_MIN), _TB_MAX)
    grid = (pl.cdiv(M, TB),)

    # No explicit pad: the last (partial) block's extra lanes hold undefined data
    # whose maxima are never written back (Pallas discards the out-of-range part
    # of the output block).
    out = pl.pallas_call(
        _maxpool_kernel,
        out_shape=jax.ShapeDtypeStruct((1, M), x.dtype),
        grid=grid,
        in_specs=[pl.BlockSpec((K * K, TB), lambda i: (0, i))],
        out_specs=pl.BlockSpec((1, TB), lambda i: (0, i)),
        compiler_params=pltpu.CompilerParams(
            dimension_semantics=("parallel",),   # independent lane tiles -> megacore on v7x
        ),
    )(win)

    return out[0].reshape(N, C, H_out, W_out)


class MpNN:
    """JAX/Pallas equivalent of the PyTorch mpNN module (MaxPool2d(3))."""

    def __init__(self):
        self.kernel_size = 3  # stride defaults to kernel_size, ceil_mode=False

    def __call__(self, x):
        return maxpool2d_pallas(x, kernel_size=self.kernel_size)


def _ref_maxpool(x, k):
    return jax.lax.reduce_window(
        x, -jnp.inf, jax.lax.max,
        window_dimensions=(1, 1, k, k),
        window_strides=(1, 1, k, k),
        padding="VALID",
    )


if __name__ == "__main__":
    key = jax.random.PRNGKey(0)
    model = MpNN()

    # 1) Exact mpNN spec case: input reshaped to (-1, 1, 5, 5). Tiny -> XLA fallback path.
    raw = jax.random.normal(key, (2, 5, 5), dtype=jnp.float32)
    x = jnp.reshape(raw, (-1, 1, 5, 5))                     # (2, 1, 5, 5)
    out = jax.block_until_ready(model(x))
    ref = _ref_maxpool(x, 3)
    assert out.shape == (2, 1, 1, 1), out.shape
    assert jnp.allclose(out, ref), (out, ref)

    # 2) Pallas path (M = 2*4*16*16 = 2048 lanes, divides evenly into 4 grid steps).
    k1, k2 = jax.random.split(key)
    x2 = jax.random.normal(k1, (2, 4, 48, 48), dtype=jnp.float32)
    out2 = jax.block_until_ready(model(x2))
    ref2 = _ref_maxpool(x2, 3)
    assert out2.shape == (2, 4, 16, 16), out2.shape
    assert jnp.allclose(out2, ref2)

    # 3) Pallas path with a partial last block (M = 5*3*13*13 = 2535, not a multiple of 128).
    x3 = jax.random.normal(k2, (5, 3, 39, 39), dtype=jnp.float32)
    out3 = jax.block_until_ready(model(x3))
    ref3 = _ref_maxpool(x3, 3)
    assert out3.shape == (5, 3, 13, 13), out3.shape
    assert jnp.allclose(out3, ref3)

    print("KERNEL_OK")
</pallas_src>

<mosaic_0001>
module attributes {stable_mosaic.version = 11 : i64} {
  func.func @_maxpool_kernel(%arg0: i32, %arg1: memref<9x512xf32, #tpu.memory_space<vmem>>, %arg2: memref<1x512xf32, #tpu.memory_space<vmem>>) attributes {dimension_semantics = [#tpu.dimension_semantics<parallel>], iteration_bounds = array<i64: 4>, scalar_prefetch = 0 : i64, scratch_operands = 0 : i64, tpu.core_type = #tpu.core_type<tc>, window_params = [{transform_indices = @transform_0, window_bounds = array<i64: 9, 512>}, {transform_indices = @transform_1, window_bounds = array<i64: 1, 512>}]} {
    %c0 = arith.constant 0 : index
    %c0_0 = arith.constant 0 : index
    %0 = vector.load %arg1[%c0, %c0_0] : memref<9x512xf32, #tpu.memory_space<vmem>>, vector<9x512xf32>
    %cst = arith.constant dense<0xFF800000> : vector<512xf32>
    %1 = vector.multi_reduction <maximumf>, %0, %cst [0] : vector<9x512xf32> to vector<512xf32>
    %2 = vector.shape_cast %1 : vector<512xf32> to vector<1x512xf32>
    %c0_1 = arith.constant 0 : index
    %c0_2 = arith.constant 0 : index
    %3 = vector.load %arg2[%c0_1, %c0_2] : memref<1x512xf32, #tpu.memory_space<vmem>>, vector<1x512xf32>
    tpu.vector_store %arg2[%c0_1, %c0_2], %2 {strides = array<i32>} : memref<1x512xf32, #tpu.memory_space<vmem>>, vector<1x512xf32>,
    return
  }
  func.func @transform_0(%arg0: i32) -> (i32, i32) {
    %c0_i32 = arith.constant 0 : i32
    %c0_i32_0 = arith.constant 0 : i32
    return %c0_i32, %arg0 : i32, i32
  }
  func.func @transform_1(%arg0: i32) -> (i32, i32) {
    %c0_i32 = arith.constant 0 : i32
    %c0_i32_0 = arith.constant 0 : i32
    return %c0_i32, %arg0 : i32, i32
  }
}

</mosaic_0001>

<bundles_post_ra>
// kernel: tpu_custom_call.1
= control target key start
LH: loop header
LB: loop body
LE: loop exit
PB: predicated region body
PF: predicated region fallthrough
CT: control target
= control target key end

     0   :  { %6 = vsyncpa [#allocation3], 0  ;;  %s587_s0 = inlined_call_operand.hbm [shape: f32[9,2048], index: 0, kind: input, shape index: {}]   ;;  %s588_s1 = inlined_call_operand.hbm [shape: f32[1,2048], index: 1, kind: output, shape index: {}]  }
   0x1   :  { %8 = vsyncpa [#allocation3 + $0x1], 0 }
   0x2   :  { %9 = vsyncpa [#allocation4], 0 }
   0x3   :  { %11 = vsyncpa [#allocation4 + $0x1], 0  ;;  %s458_s6 = smov 0   ;;  %s460_s7 = smov 0  }
   0x4   :  { %s462_s8 = smov 0   ;;  %s464_s9 = smov 0  }
   0x5 LB: > { %s479_s10 = sadd.s32 4294967295, %s443_s9   ;;  %s284_s11 = sadd.s32 4294967294, %s443_s9   ;;  %s443_s9 = sphi %s464_s9, %s597_s9   ;;  %s439_s8 = sphi %s462_s8, %s596_s8   ;;  %s435_s7 = sphi %s460_s7, %s595_s7   ;;  %s431_s6 = sphi %s458_s6, %s594_s6  }
   0x6   : > { %s483_s12 = sadd.s32 1, %s443_s9   ;;  %s24_s13 = sadd.s32 1, %s439_s8 }
   0x7   : > { %s21_s14 = ssub.s32 %s443_s9, %s483_s12  ;;  %p31_p0 = scmp.ne.s32.totalorder %s439_s8, %s435_s7 }
   0x8   : > { %p22_p1 = scmp.eq.s32.totalorder %s21_s14, 0  ;;  %p32_p2 = scmp.eq.s32.totalorder %s443_s9, 0 }
   0x9   : > { %p37_p3 = scmp.ne.s32.totalorder %s435_s7, %s431_s6  ;;  %p38_p4 = scmp.eq.s32.totalorder %s479_s10, 0 }
   0xa   : > { %s495_s15 = scalar_select %p22_p1, %s439_s8, %s24_s13  }
   0xb   : > { %p497_p5 = por %p32_p2, %p31_p0  ;;  %p501_p6 = por %p38_p4, %p37_p3 }
   0xc   : > { %p61_p7 = scmp.eq.s32.totalorder %s479_s10, 3  ;;  %p67_p8 = scmp.eq.s32.totalorder %s284_s11, 3 }
   0xd   : > { %p310_p9 = scmp.lt.s32.totalorder %s443_s9, 4  ;;  %s87_s20 = sand.u32 1, %s439_s8  }
   0xe   : > { %p507_p10 = por %p61_p7, %p31_p0  ;;  %p511_p11 = por %p67_p8, %p37_p3 }
   0xf   : > { %s297_s21 = sshll.u32 %s443_s9, 5  ;;  %s287_s22 = sshll.u32 %s87_s20, 6 }
  0x10   : > { %s96_s25 = scalar_lea.hbm %s587_s0, %s297_s21  ;;  %s91_s27 = scalar_lea.vmem [#allocation2], %s287_s22 }
  0x11   : > { %s97_s26 = sshll.u32 %s96_s25, 4  ;;  %s99_s28 = sshll.u32 %s91_s27, 4  ;;  %s98_s26 = int_to_ptr.hbm [resolvable:$true] %s97_s26  ;;  %s100_s28 = int_to_ptr.vmem [resolvable:$true] %s99_s28 }
  0x12   : > { %p522_p12 = pnand %p310_p9, %p497_p5  ;;  %p290_p13 = scmp.ge.s32.totalorder %s443_s9, 1 }
  0x13   : > { %s88_s30 = scalar_lea.sflag [#allocation3], %s87_s20  ;;  %s347_s2 = sshra.s32 %s98_s26, 4  ;;  %s348_s2 = int_to_ptr.hbm [resolvable:$true] %s347_s2 }
  0x14   : > { %s349_s3 = scalar_lea.hbm %s348_s2, 64  ;;  %p351_p1 = pneg %p522_p12 }
  0x15   : > { %p350_p0 = scmp.ne.s32.totalorder %s348_s2, %s349_s3  ;;  %s354_s11 = scalar_lea.hbm %s587_s0, 256 }
  0x16   : > { %p355_p4 = scmp.lt.s32.totalorder %s348_s2, %s587_s0  ;;  %p356_p5 = scmp.lt.s32.totalorder %s354_s11, %s349_s3 }
  0x17   : > { %p352_p2 = pnand %p351_p1, %p350_p0 }
  0x18   : > { %p357_p7 = por %p356_p5, %p355_p4 }
  0x19   : > { %p353_p3 = pneg %p352_p2 }
  0x1b   : > { %p358_p8 = pnand %p357_p7, %p353_p3 }
  0x1d   : > { %361 = shalt.err (!%p358_p8)
}
  0x1e   : > { %s445_s16 = smov 2048   ;;  %s446_s20 = smov 512  }
  0x1f   : > { %s447_s21 = smov 32   ;;  %p107_p9 = scmp.lt.s32.totalorder %s443_s9, 5 }
  0x20   : > { %305 = dma.hbm_to_vmem [thread:$0]  (!%p522_p12), %s98_s26, 1024, %s100_s28, %s88_s30, %s445_s16, %s446_s20, %s447_s21  }
  0x21   : > { %p108_p0 = pnand %p290_p13, %p107_p9 }
  0x22   : > { %s541_s22 = sand.u32 (!%p108_p0), 1, %s435_s7  }
  0x23   : > { %111 = sbr.rel (%p108_p0) target bundleno = 66 (0x42), region = 24  ;;  %s291_s23 = sshll.u32 (!%p108_p0), %s541_s22, 6 }
  0x24   : > { %s114_s24 = scalar_lea.sflag (!%p108_p0), [#allocation3], %s541_s22  ;;  %s117_s25 = scalar_lea.vmem (!%p108_p0), [#allocation2], %s291_s23 }
  0x28   : > { %422 = dma.done.wait (%p501_p6), %s114_s24, 1024  }
  0x29   : > { %424 = vsyncadd (%p501_p6), %s114_s24, 4294966272  ;;  %vm147_vm0 = vcmask 1040384   ;;  %v139_v0 = vld [vmem:[%s117_s25] sm:$0xff]  ;;  %v140_v1 = vld [vmem:[%s117_s25 + $0x8] sm:$0xff]  ;;  %s292_s17 = sshll.u32 %s541_s22, 2  ;;  %s294_s26 = sshll.u32 %s479_s10, 2  ;;  %v193_v38 = vlaneseq }
  0x2a   : > { %v141_v2 = vld [vmem:[%s117_s25 + $0x10] sm:$0xff]  ;;  %v142_v3 = vld [vmem:[%s117_s25 + $0x18] sm:$0xff]  ;;  %v143_v4 = vld [vmem:[%s117_s25 + $0x20] sm:$0x1]  ;;  %s209_s29 = scalar_lea.hbm %s588_s1, %s294_s26  ;;  %vm188_vm1 = vcmask 1042434   ;;  %s136_s30 = scalar_lea.vmem [#allocation5], %s292_s17 }
  0x2b   : > { %v144_v5 = vld [vmem:[%s117_s25 + $0x28] sm:$0x1]  ;;  %v145_v6 = vld [vmem:[%s117_s25 + $0x30] sm:$0x1]  ;;  %v146_v7 = vld [vmem:[%s117_s25 + $0x38] sm:$0x1] }
  0x2c   : > { %v148_v8 = vsel %vm147_vm0, %v143_v4, -inf  ;;  %v156_v9 = vsel %vm147_vm0, %v144_v5, -inf  ;;  %v164_v12 = vsel %vm147_vm0, %v145_v6, -inf  ;;  %v172_v13 = vsel %vm147_vm0, %v146_v7, -inf  ;;  %s211_s10 = sshll.u32 %s136_s30, 4  ;;  %s213_s2 = sshll.u32 %s209_s29, 4  ;;  %s212_s10 = int_to_ptr.vmem [resolvable:$true] %s211_s10  ;;  %s214_s2 = int_to_ptr.hbm [resolvable:$true] %s213_s2 }
  0x2d   : > { %v149_v10 = vmax.f32 %v139_v0, %v148_v8  ;;  %v157_v11 = vmax.f32 %v140_v1, %v156_v9  ;;  %v165_v14 = vmax.f32 %v141_v2, %v164_v12  ;;  %v173_v15 = vmax.f32 %v142_v3, %v172_v13  ;;  %s199_s3 = scalar_lea.sflag [#allocation4], %s541_s22  ;;  %s391_s4 = sshra.s32 %s214_s2, 4  ;;  %s392_s4 = int_to_ptr.hbm [resolvable:$true] %s391_s4 }
  0x2e   : > { %vm190_vm2 = vcmask 1041408   ;;  %vm195_vm3 = vcmp.lt.s32.totalorder %v193_v38, 512  ;;  %s393_s5 = scalar_lea.hbm %s392_s4, 4  ;;  %s397_s14 = scalar_lea.hbm %s588_s1, 16 }
  0x2f   : > { %v150_v16 = vrot.slane %v149_v10, 4  ;;  %v158_v17 = vrot.slane %v157_v11, 4  ;;  %v166_v18 = vrot.slane %v165_v14, 4  ;;  %v174_v19 = vrot.slane %v173_v15, 4  ;;  %p394_p6 = scmp.ne.s32.totalorder %s392_s4, %s393_s5  ;;  %p398_p1 = scmp.lt.s32.totalorder %s392_s4, %s588_s1 }
  0x30   : > { %p399_p2 = scmp.lt.s32.totalorder %s397_s14, %s393_s5 }
  0x31   : > { %v151_v20 = vmax.f32 %v149_v10, %v150_v16  ;;  %v159_v21 = vmax.f32 %v157_v11, %v158_v17  ;;  %v167_v22 = vmax.f32 %v165_v14, %v166_v18  ;;  %v175_v23 = vmax.f32 %v173_v15, %v174_v19  ;;  %p395_p12 = pnand %p394_p6, %p507_p10 }
  0x32   : > { %p400_p3 = por %p399_p2, %p398_p1 }
  0x33   : > { %v152_v24 = vrot.slane %v151_v20, 2  ;;  %v160_v25 = vrot.slane %v159_v21, 2  ;;  %v168_v26 = vrot.slane %v167_v22, 2  ;;  %v176_v27 = vrot.slane %v175_v23, 2  ;;  %p396_p13 = pneg %p395_p12 }
  0x35   : > { %v153_v28 = vmax.f32 %v151_v20, %v152_v24  ;;  %v161_v29 = vmax.f32 %v159_v21, %v160_v25  ;;  %v169_v30 = vmax.f32 %v167_v22, %v168_v26  ;;  %v177_v31 = vmax.f32 %v175_v23, %v176_v27  ;;  %p401_p4 = pnand %p400_p3, %p396_p13 }
  0x37   : > { %v154_v32 = vrot.slane %v153_v28, 1  ;;  %v162_v33 = vrot.slane %v161_v29, 1  ;;  %v170_v34 = vrot.slane %v169_v30, 1  ;;  %v178_v35 = vrot.slane %v177_v31, 1 }
  0x39   : > { %v155_v36 = vmax.f32 %v153_v28, %v154_v32  ;;  %v163_v37 = vmax.f32 %v161_v29, %v162_v33  ;;  %v171_v39 = vmax.f32 %v169_v30, %v170_v34  ;;  %v179_v40 = vmax.f32 %v177_v31, %v178_v35 }
  0x3b   : > { %v184_v41 = vrot.slane %v163_v37, 7  ;;  %v185_v42 = vrot.slane %v171_v39, 6  ;;  %v186_v43 = vrot.slane %v179_v40, 5 }
  0x3d   : > { %v187_v44 = vsel %vm147_vm0, %v155_v36, %v184_v41  ;;  %v189_v45 = vsel %vm188_vm1, %v185_v42, %v186_v43 }
  0x3e   : > { %v191_v46 = vsel %vm190_vm2, %v187_v44, %v189_v45 }
  0x3f   : > { %197 = vst.msk [vmem:[%s136_s30] sm:$0xf] %vm195_vm3, %v191_v46 }
  0x40   : > { %404 = shalt.err (!%p401_p4)
}
  0x41   : > { %300 = dma.vmem_to_hbm [thread:$0]  (%p507_p10), %s212_s10, 64, %s214_s2, %s199_s3  }
  0x42 PF: > { %p311_p5 = scmp.ge.s32.totalorder %s443_s9, 2  ;;  %s225_s21 = sand.u32 1, %s431_s6  }
  0x43   : > { %s226_s22 = scalar_lea.sflag [#allocation4], %s225_s21 }
  0x44   : > { %p307_p7 = pnand %p311_p5, %p511_p11 }
  0x46   : > { %p308_p8 = pneg %p307_p7 }
  0x48   : > { %426 = dma.done.wait (%p308_p8), %s226_s22, 64  }
  0x49   : > { %428 = vsyncadd (%p308_p8), %s226_s22, 4294967232  ;;  %p14_p9 = scmp.ge.s32.totalorder %s483_s12, 6   ;;  %s594_s6 = smov %s435_s7 }
  0x4a   : > { %s595_s7 = smov %s439_s8  ;;  %s596_s8 = smov %s495_s15 }
  0x4b   : > { %s597_s9 = smov %s483_s12  ;;  %16 = sbr.rel (!%p14_p9) target bundleno = 5 (0x5), region = 69 }
  0x50   :  { %232 = vsyncpa [#allocation3], 1 }
  0x51   :  { %234 = vsyncpa [#allocation3 + $0x1], 1 }
  0x52   :  { %235 = vsyncpa [#allocation4], 1 }
  0x53   :  { %237 = vsyncpa [#allocation4 + $0x1], 1 }

</bundles_post_ra>
